<compile_context>
chip_gen: v7x
topology: tpu7x:2x2x1
jax: 0.10.0
libtpu: 0.0.40
codegen_flags: <defaults>
</compile_context>

<pallas_src>
import functools

import jax
import jax.numpy as jnp
from jax.experimental import pallas as pl
from jax.experimental.pallas import tpu as pltpu

_EPS = 1e-12


# --------------------------------------------------------------------------
# Kernels
# --------------------------------------------------------------------------
def _gumbel_kernel(mu_ref, log_sigma_ref, std_z_ref, log_alpha_ref, unif_ref,
                   out_ref, *, inv_temperature):
    """Unsupervised path: out = [mu + exp(log_sigma)*N(0,1) | gumbel_softmax]."""
    # ---- continuous latent ------------------------------------------------
    z = mu_ref[...] + jnp.exp(log_sigma_ref[...]) * std_z_ref[...]

    # ---- discrete latent: gumbel-softmax over the class (lane) axis --------
    gumbel = -jnp.log(-jnp.log(unif_ref[...] + _EPS) + _EPS)
    logit = (log_alpha_ref[...] + gumbel) * inv_temperature
    m = jnp.max(logit, axis=-1, keepdims=True)          # XLU lane reduce
    e = jnp.exp(logit - m)                               # EUP
    c = e / jnp.sum(e, axis=-1, keepdims=True)

    # ---- single fused full-row store ---------------------------------------
    out_ref[...] = jnp.concatenate([z, c], axis=-1)


def _supervised_kernel(mu_ref, log_sigma_ref, std_z_ref, c_ref, out_ref):
    """Supervised / mixup path: skip the gumbel-softmax branch entirely."""
    z = mu_ref[...] + jnp.exp(log_sigma_ref[...]) * std_z_ref[...]
    out_ref[...] = jnp.concatenate([z, c_ref[...]], axis=-1)


# --------------------------------------------------------------------------
# Tiling / pallas_call plumbing
# --------------------------------------------------------------------------
def _pick_tile(batch, dz, dc, block_rows):
    """Batch tile: as large as VMEM allows, but keep several grid steps."""
    # Conservative double-buffered f32 working-set budget (v7x: 32 MiB scoped).
    budget = 24 * 1024 * 1024
    per_row = 4 * (4 * dz + 3 * dc) * 2          # all in/out streams, x2 buffers
    cap = max(8, int(budget // per_row) // 8 * 8)
    block_rows = min(max(8, (int(block_rows) // 8) * 8), cap)
    if batch <= 8:
        return batch
    # Aim for >= ~4 grid steps (pipelining + v7x two-TC sharding of the
    # "parallel" batch axis), never below 8 rows, never above block_rows.
    target = max(8, ((-(-batch // 4)) + 7) // 8 * 8)
    return min(block_rows, target)


def _row_specs(tb, widths):
    return [pl.BlockSpec((tb, w), lambda i: (i, 0)) for w in widths]


def _run_kernel(kernel, inputs, in_widths, out_width, batch, tb):
    grid = (pl.cdiv(batch, tb),)
    return pl.pallas_call(
        kernel,
        out_shape=jax.ShapeDtypeStruct((batch, out_width), jnp.float32),
        grid_spec=pltpu.PrefetchScalarGridSpec(
            num_scalar_prefetch=0,
            grid=grid,
            in_specs=_row_specs(tb, in_widths),
            out_specs=pl.BlockSpec((tb, out_width), lambda i: (i, 0)),
        ),
        compiler_params=pltpu.CompilerParams(
            dimension_semantics=("parallel",)),
    )(*inputs)


# --------------------------------------------------------------------------
# Module wrapper
# --------------------------------------------------------------------------
class Sample:
    """JAX/Pallas equivalent of the PyTorch Sample module."""

    def __init__(self, temperature, block_rows=8192):
        self._temperature = float(temperature)
        self._block_rows = int(block_rows)

    def __call__(self, key, norm_mean, norm_log_sigma, disc_log_alpha,
                 disc_label=None, mixup=False, disc_label_mixup=None,
                 mixup_lam=None):
        batch, dz = norm_mean.shape
        _, dc = disc_log_alpha.shape

        norm_mean = norm_mean.astype(jnp.float32)
        norm_log_sigma = norm_log_sigma.astype(jnp.float32)

        k_norm, k_unif = jax.random.split(key)
        std_z = jax.random.normal(k_norm, (batch, dz), dtype=jnp.float32)

        tb = _pick_tile(batch, dz, dc, self._block_rows)

        if disc_label is not None:
            # Label / mixup path: one-hot build is trivial plain-JAX glue; the
            # kernel fuses it into the output and skips the gumbel branch.
            c_a = jax.nn.one_hot(disc_label, dc, dtype=jnp.float32)
            if mixup:
                c_b = jax.nn.one_hot(disc_label_mixup, dc, dtype=jnp.float32)
                c = mixup_lam * c_a + (1.0 - mixup_lam) * c_b
            else:
                c = c_a
            fused = _run_kernel(
                _supervised_kernel,
                (norm_mean, norm_log_sigma, std_z, c),
                (dz, dz, dz, dc), dz + dc, batch, tb)
        else:
            disc_log_alpha = disc_log_alpha.astype(jnp.float32)
            unif = jax.random.uniform(k_unif, (batch, dc), dtype=jnp.float32)
            kernel = functools.partial(
                _gumbel_kernel, inv_temperature=1.0 / self._temperature)
            fused = _run_kernel(
                kernel,
                (norm_mean, norm_log_sigma, std_z, disc_log_alpha, unif),
                (dz, dz, dz, dc, dc), dz + dc, batch, tb)

        return fused.reshape(batch, dz + dc, 1, 1)


# --------------------------------------------------------------------------
# Self-test
# --------------------------------------------------------------------------
if __name__ == "__main__":
    key = jax.random.PRNGKey(0)
    k1, k2, k3, k_noise = jax.random.split(key, 4)

    B, Dz, Dc = 16, 32, 10
    norm_mean = jax.random.normal(k1, (B, Dz), dtype=jnp.float32)
    norm_log_sigma = 0.1 * jax.random.normal(k2, (B, Dz), dtype=jnp.float32)
    disc_log_alpha = jax.random.normal(k3, (B, Dc), dtype=jnp.float32)

    sampler = Sample(temperature=0.67)   # B=16 -> tb=8 -> grid of 2 batch tiles

    # ---- unsupervised path (gumbel-softmax) --------------------------------
    out = sampler(k_noise, norm_mean, norm_log_sigma, disc_log_alpha)
    out = jax.block_until_ready(out)
    assert out.shape == (B, Dz + Dc, 1, 1)
    assert bool(jnp.all(jnp.isfinite(out)))

    disc_part = out[:, Dz:, 0, 0]
    assert bool(jnp.all(disc_part >= 0.0)) and bool(jnp.all(disc_part <= 1.0))
    assert jnp.allclose(jnp.sum(disc_part, axis=1), 1.0, atol=1e-4)

    # ---- supervised (one-hot) path ------------------------------------------
    labels = jnp.arange(B, dtype=jnp.int32) % Dc
    out_sup = sampler(k_noise, norm_mean, norm_log_sigma, disc_log_alpha,
                      disc_label=labels)
    out_sup = jax.block_until_ready(out_sup)
    assert out_sup.shape == (B, Dz + Dc, 1, 1)
    assert jnp.allclose(out_sup[:, Dz:, 0, 0],
                        jax.nn.one_hot(labels, Dc, dtype=jnp.float32))

    # ---- mixup path ----------------------------------------------------------
    labels_b = (labels + 1) % Dc
    out_mix = sampler(k_noise, norm_mean, norm_log_sigma, disc_log_alpha,
                      disc_label=labels, mixup=True,
                      disc_label_mixup=labels_b, mixup_lam=0.3)
    out_mix = jax.block_until_ready(out_mix)
    assert out_mix.shape == (B, Dz + Dc, 1, 1)
    assert bool(jnp.all(jnp.isfinite(out_mix)))

    print("KERNEL_OK")
</pallas_src>

<mosaic_0001>
module attributes {stable_mosaic.version = 11 : i64} {
  func.func @_gumbel_kernel(%arg0: i32, %arg1: memref<8x32xf32, #tpu.memory_space<vmem>>, %arg2: memref<8x32xf32, #tpu.memory_space<vmem>>, %arg3: memref<8x32xf32, #tpu.memory_space<vmem>>, %arg4: memref<8x10xf32, #tpu.memory_space<vmem>>, %arg5: memref<8x10xf32, #tpu.memory_space<vmem>>, %arg6: memref<8x42xf32, #tpu.memory_space<vmem>>) attributes {dimension_semantics = [#tpu.dimension_semantics<parallel>], iteration_bounds = array<i64: 2>, scalar_prefetch = 0 : i64, scratch_operands = 0 : i64, tpu.core_type = #tpu.core_type<tc>, window_params = [{transform_indices = @transform_0, window_bounds = array<i64: 8, 32>}, {transform_indices = @transform_1, window_bounds = array<i64: 8, 32>}, {transform_indices = @transform_2, window_bounds = array<i64: 8, 32>}, {transform_indices = @transform_3, window_bounds = array<i64: 8, 10>}, {transform_indices = @transform_4, window_bounds = array<i64: 8, 10>}, {transform_indices = @transform_5, window_bounds = array<i64: 8, 42>}]} {
    %c0 = arith.constant 0 : index
    %c0_0 = arith.constant 0 : index
    %0 = vector.load %arg1[%c0, %c0_0] : memref<8x32xf32, #tpu.memory_space<vmem>>, vector<8x32xf32>
    %c0_1 = arith.constant 0 : index
    %c0_2 = arith.constant 0 : index
    %1 = vector.load %arg2[%c0_1, %c0_2] : memref<8x32xf32, #tpu.memory_space<vmem>>, vector<8x32xf32>
    %2 = math.exp %1 : vector<8x32xf32>
    %c0_3 = arith.constant 0 : index
    %c0_4 = arith.constant 0 : index
    %3 = vector.load %arg3[%c0_3, %c0_4] : memref<8x32xf32, #tpu.memory_space<vmem>>, vector<8x32xf32>
    %4 = arith.mulf %2, %3 : vector<8x32xf32>
    %5 = arith.addf %0, %4 : vector<8x32xf32>
    %c0_5 = arith.constant 0 : index
    %c0_6 = arith.constant 0 : index
    %6 = vector.load %arg5[%c0_5, %c0_6] : memref<8x10xf32, #tpu.memory_space<vmem>>, vector<8x10xf32>
    %cst = arith.constant 9.99999996E-13 : f32
    %7 = vector.broadcast %cst : f32 to vector<8x10xf32>
    %8 = arith.addf %6, %7 : vector<8x10xf32>
    %9 = math.log %8 : vector<8x10xf32>
    %cst_7 = arith.constant 0.000000e+00 : f32
    %10 = vector.broadcast %cst_7 : f32 to vector<8x10xf32>
    %11 = arith.subf %10, %9 : vector<8x10xf32>
    %cst_8 = arith.constant 9.99999996E-13 : f32
    %12 = vector.broadcast %cst_8 : f32 to vector<8x10xf32>
    %13 = arith.addf %11, %12 : vector<8x10xf32>
    %14 = math.log %13 : vector<8x10xf32>
    %cst_9 = arith.constant 0.000000e+00 : f32
    %15 = vector.broadcast %cst_9 : f32 to vector<8x10xf32>
    %16 = arith.subf %15, %14 : vector<8x10xf32>
    %c0_10 = arith.constant 0 : index
    %c0_11 = arith.constant 0 : index
    %17 = vector.load %arg4[%c0_10, %c0_11] : memref<8x10xf32, #tpu.memory_space<vmem>>, vector<8x10xf32>
    %18 = arith.addf %17, %16 : vector<8x10xf32>
    %cst_12 = arith.constant 1.49253726 : f32
    %19 = vector.broadcast %cst_12 : f32 to vector<8x10xf32>
    %20 = arith.mulf %18, %19 : vector<8x10xf32>
    %cst_13 = arith.constant dense<0xFF800000> : vector<8xf32>
    %21 = vector.multi_reduction <maximumf>, %20, %cst_13 [1] : vector<8x10xf32> to vector<8xf32>
    %22 = vector.shape_cast %21 : vector<8xf32> to vector<8x1xf32>
    %23 = vector.broadcast %22 : vector<8x1xf32> to vector<8x10xf32>
    %24 = arith.subf %20, %23 : vector<8x10xf32>
    %25 = math.exp %24 : vector<8x10xf32>
    %cst_14 = arith.constant dense<0.000000e+00> : vector<8xf32>
    %26 = vector.multi_reduction <add>, %25, %cst_14 [1] : vector<8x10xf32> to vector<8xf32>
    %27 = vector.shape_cast %26 : vector<8xf32> to vector<8x1xf32>
    %28 = vector.broadcast %27 : vector<8x1xf32> to vector<8x10xf32>
    %29 = arith.divf %25, %28 : vector<8x10xf32>
    %30 = tpu.concatenate %5, %29 in 1 : vector<8x32xf32>, vector<8x10xf32> -> vector<8x42xf32>
    %c0_15 = arith.constant 0 : index
    %c0_16 = arith.constant 0 : index
    %31 = vector.load %arg6[%c0_15, %c0_16] : memref<8x42xf32, #tpu.memory_space<vmem>>, vector<8x42xf32>
    tpu.vector_store %arg6[%c0_15, %c0_16], %30 {strides = array<i32>} : memref<8x42xf32, #tpu.memory_space<vmem>>, vector<8x42xf32>,
    return
  }
  func.func @transform_0(%arg0: i32) -> (i32, i32) {
    %c0_i32 = arith.constant 0 : i32
    %c0_i32_0 = arith.constant 0 : i32
    return %arg0, %c0_i32 : i32, i32
  }
  func.func @transform_1(%arg0: i32) -> (i32, i32) {
    %c0_i32 = arith.constant 0 : i32
    %c0_i32_0 = arith.constant 0 : i32
    return %arg0, %c0_i32 : i32, i32
  }
  func.func @transform_2(%arg0: i32) -> (i32, i32) {
    %c0_i32 = arith.constant 0 : i32
    %c0_i32_0 = arith.constant 0 : i32
    return %arg0, %c0_i32 : i32, i32
  }
  func.func @transform_3(%arg0: i32) -> (i32, i32) {
    %c0_i32 = arith.constant 0 : i32
    %c0_i32_0 = arith.constant 0 : i32
    return %arg0, %c0_i32 : i32, i32
  }
  func.func @transform_4(%arg0: i32) -> (i32, i32) {
    %c0_i32 = arith.constant 0 : i32
    %c0_i32_0 = arith.constant 0 : i32
    return %arg0, %c0_i32 : i32, i32
  }
  func.func @transform_5(%arg0: i32) -> (i32, i32) {
    %c0_i32 = arith.constant 0 : i32
    %c0_i32_0 = arith.constant 0 : i32
    return %arg0, %c0_i32 : i32, i32
  }
}

</mosaic_0001>

<bundles_post_ra>
// kernel: tpu_custom_call.1
= control target key start
LH: loop header
LB: loop body
LE: loop exit
PB: predicated region body
PF: predicated region fallthrough
CT: control target
= control target key end

     0   :  { %s1264_s0 = inlined_call_operand.hbm [shape: f32[16,32], index: 0, kind: input, shape index: {}]   ;;  %s1265_s1 = inlined_call_operand.hbm [shape: f32[16,32], index: 1, kind: input, shape index: {}]   ;;  %s1266_s2 = inlined_call_operand.hbm [shape: f32[16,32], index: 2, kind: input, shape index: {}]   ;;  %s1267_s3 = inlined_call_operand.hbm [shape: f32[16,10], index: 3, kind: input, shape index: {}]   ;;  %s1268_s4 = inlined_call_operand.hbm [shape: f32[16,10], index: 4, kind: input, shape index: {}]   ;;  %s1269_s5 = inlined_call_operand.hbm [shape: f32[16,42], index: 5, kind: output, shape index: {}]  }
   0x1   :  { %1280 = sst [smem:[#allocation20_spill]] %s1264_s0 }
   0x2   :  { %1281 = sst [smem:[#allocation21_spill]] %s1265_s1 }
   0x3   :  { %1282 = sst [smem:[#allocation22_spill]] %s1267_s3 }
   0x4   :  { %10 = vsyncpa [#allocation3], 0 }
   0x5   :  { %12 = vsyncpa [#allocation3 + $0x1], 0 }
   0x6   :  { %13 = vsyncpa [#allocation6], 0 }
   0x7   :  { %15 = vsyncpa [#allocation6 + $0x1], 0 }
   0x8   :  { %16 = vsyncpa [#allocation9], 0 }
   0x9   :  { %18 = vsyncpa [#allocation9 + $0x1], 0 }
   0xa   :  { %19 = vsyncpa [#allocation4], 0 }
   0xb   :  { %21 = vsyncpa [#allocation4 + $0x1], 0  ;;  %s955_s18 = smov 0   ;;  %s957_s19 = smov 0  }
   0xc   :  { %s959_s20 = smov 0   ;;  %s961_s21 = smov 0  }
   0xd LB: > { %1283 = sst [smem:[#allocation16_spill]] %s912_s20  ;;  %s976_s22 = sadd.s32 4294967295, %s916_s21   ;;  %s916_s21 = sphi %s961_s21, %s1307_s21   ;;  %s912_s20 = sphi %s959_s20, %s1309_s20   ;;  %s908_s19 = sphi %s957_s19, %s1311_s19   ;;  %s904_s18 = sphi %s955_s18, %s1310_s18  }
   0xe   : > { %1284 = sst [smem:[#allocation17_spill]] %s916_s21  ;;  %s591_s23 = sadd.s32 4294967294, %s916_s21  }
   0xf   : > { %s980_s24 = sadd.s32 1, %s916_s21   ;;  %s34_s25 = sadd.s32 1, %s912_s20 }
  0x10   : > { %1285 = sst [smem:[#allocation18_spill]] %s980_s24  ;;  %s31_s26 = ssub.s32 %s916_s21, %s980_s24 }
  0x11   : > { %p41_p0 = scmp.ne.s32.totalorder %s912_s20, %s908_s19  ;;  %p32_p1 = scmp.eq.s32.totalorder %s31_s26, 0 }
  0x12   : > { %p42_p2 = scmp.eq.s32.totalorder %s916_s21, 0  ;;  %p47_p3 = scmp.ne.s32.totalorder %s908_s19, %s904_s18 }
  0x13   : > { %p48_p4 = scmp.eq.s32.totalorder %s976_s22, 0  ;;  %p175_p7 = scmp.eq.s32.totalorder %s976_s22, 1 }
  0x14   : > { %s992_s27 = scalar_select %p32_p1, %s912_s20, %s34_s25  }
  0x15   : > { %p43_p5 = por %p42_p2, %p41_p0  ;;  %p994_p6 = por %p48_p4, %p47_p3 }
  0x16   : > { %1286 = sst [smem:[#allocation19_spill]] %s992_s27  ;;  %p181_p8 = scmp.eq.s32.totalorder %s591_s23, 1 }
  0x17   : > { %s1287_s28 = scalar_select %p994_p6, 1, 0 }
  0x18   : > { %p647_p10 = scmp.lt.s32.totalorder %s916_s21, 2  ;;  %p1001_p11 = por %p175_p7, %p41_p0 }
  0x19   : > { %p1005_p12 = por %p181_p8, %p47_p3  ;;  %s1270_s6 = sand.u32 1, %s912_s20  }
  0x1a   : > { %s1288_s29 = scalar_select %p1001_p11, 1, 0 }
  0x1b   : > { %s1289_s30 = scalar_select %p1005_p12, 1, 0 }
  0x1c   : > { %s1011_s7 = sshll.u32 %s916_s21, 7  ;;  %s1015_s8 = sshll.u32 %s1270_s6, 3 }
  0x1d   : > { %p1017_p13 = pnand %p647_p10, %p43_p5  ;;  %s219_s10 = sand.u32 1, %s916_s21  }
  0x1e   : > { %s1291_s1 = sld [smem:[#allocation21_spill]]  ;;  %s223_s14 = scalar_lea.vmem [#allocation5], %s1015_s8 }
  0x1f   : > { %s1290_s9 = scalar_select %p1017_p13, 1, 0 }
  0x20   : > { %s230_s15 = sshll.u32 %s223_s14, 4  ;;  %s1034_s16 = scalar_lea.sflag [#allocation6], %s219_s10  ;;  %s1029_s15 = int_to_ptr.vmem [resolvable:$true] %s230_s15 }
  0x21   : > { %p1040_p2 = pneg %p1017_p13 }
  0x24   : > { %s1026_s13 = scalar_lea.hbm %s1291_s1, %s1011_s7  ;;  %s697_s11 = scalar_lea.hbm %s1291_s1, 256 }
  0x25   : > { %s692_s17 = scalar_lea.hbm %s1026_s13, 128  ;;  %p698_p5 = scmp.lt.u32.totalorder %s1026_s13, %s1291_s1 }
  0x26   : > { %p693_p1 = scmp.ne.s32.totalorder %s1026_s13, %s692_s17  ;;  %p699_p7 = scmp.lt.u32.totalorder %s697_s11, %s692_s17 }
  0x27   : > { %p701_p10 = scmp.lt.u32.totalorder %s692_s17, %s1026_s13 }
  0x28   : > { %p695_p3 = pnand %p1040_p2, %p693_p1  ;;  %p700_p8 = por %p699_p7, %p698_p5 }
  0x2a   : > { %p696_p4 = pneg %p695_p3  ;;  %p702_p9 = por %p701_p10, %p700_p8 }
  0x2c   : > { %p703_p0 = pnand %p702_p9, %p696_p4 }
  0x2e   : > { %706 = shalt.err (!%p703_p0)
}
  0x2f   : > { %s707_s6 = scalar_lea.vmem %s1029_s15, 128  ;;  %s918_s25 = smov [#allocation5]  }
  0x30   : > { %p708_p1 = scmp.ne.s32.totalorder %s1029_s15, %s707_s6  ;;  %s712_s26 = sshll.u32 %s918_s25, 4  ;;  %s713_s26 = int_to_ptr.vmem [resolvable:$false] %s712_s26 }
  0x31   : > { %s714_s12 = scalar_lea.vmem %s713_s26, 256  ;;  %p715_p11 = scmp.lt.s32.totalorder %s1029_s15, %s713_s26 }
  0x32   : > { %p710_p3 = pnand %p708_p1, %p1040_p2  ;;  %p716_p6 = scmp.lt.s32.totalorder %s714_s12, %s707_s6 }
  0x34   : > { %p711_p12 = pneg %p710_p3  ;;  %p717_p5 = por %p716_p6, %p715_p11 }
  0x36   : > { %p718_p7 = pnand %p717_p5, %p711_p12 }
  0x38   : > { %721 = shalt.err (!%p718_p7)
}
  0x39   : > { %633 = dma.hbm_to_vmem [thread:$0]  (!%p1017_p13), %s1026_s13, 128, %s1029_s15, %s1034_s16  }
  0x3a   : > { %p289_p9 = scmp.lt.s32.totalorder %s916_s21, 3  ;;  %s1293_s3 = sld [smem:[#allocation22_spill]] }
  0x3b   : > { %p1294_p6 = scmp.ge.s32.totalorder %s916_s21, 1  ;;  %s259_s25 = scalar_lea.vmem [#allocation8], %s1015_s8 }
  0x3c   : > { %s266_s26 = sshll.u32 %s259_s25, 4  ;;  %s1080_s13 = scalar_lea.sflag [#allocation9], %s219_s10  ;;  %s267_s26 = int_to_ptr.vmem [resolvable:$true] %s266_s26 }
  0x3d   : > { %p1073_p11 = pnand %p1294_p6, %p289_p9 }
  0x3f   : > { %s1295_s14 = scalar_select %p1073_p11, 1, 0 }
  0x40   : > { %s1069_s6 = scalar_lea.hbm %s1293_s3, %s1011_s7  ;;  %s727_s11 = scalar_lea.hbm %s1293_s3, 256 }
  0x41   : > { %s722_s15 = scalar_lea.hbm %s1069_s6, 128  ;;  %p728_p8 = scmp.lt.u32.totalorder %s1069_s6, %s1293_s3 }
  0x42   : > { %p723_p12 = scmp.ne.s32.totalorder %s1069_s6, %s722_s15  ;;  %p729_p10 = scmp.lt.u32.totalorder %s727_s11, %s722_s15 }
  0x43   : > { %p731_p3 = scmp.lt.u32.totalorder %s722_s15, %s1069_s6 }
  0x44   : > { %p725_p0 = pnand %p723_p12, %p1040_p2  ;;  %p730_p1 = por %p729_p10, %p728_p8 }
  0x46   : > { %p726_p4 = pneg %p725_p0  ;;  %p732_p5 = por %p731_p3, %p730_p1 }
  0x48   : > { %p733_p7 = pnand %p732_p5, %p726_p4 }
  0x4a   : > { %736 = shalt.err (!%p733_p7)
}
  0x4b   : > { %s737_s10 = scalar_lea.vmem %s267_s26, 128  ;;  %s919_s25 = smov [#allocation8]  }
  0x4c   : > { %p738_p9 = scmp.ne.s32.totalorder %s267_s26, %s737_s10  ;;  %s742_s24 = sshll.u32 %s919_s25, 4  ;;  %s743_s24 = int_to_ptr.vmem [resolvable:$false] %s742_s24 }
  0x4d   : > { %s744_s12 = scalar_lea.vmem %s743_s24, 256  ;;  %p745_p0 = scmp.lt.s32.totalorder %s267_s26, %s743_s24 }
  0x4e   : > { %p740_p6 = pnand %p738_p9, %p1040_p2  ;;  %p746_p11 = scmp.lt.s32.totalorder %s744_s12, %s737_s10 }
  0x50   : > { %p741_p12 = pneg %p740_p6  ;;  %p747_p13 = por %p746_p11, %p745_p0 }
  0x52   : > { %p748_p8 = pnand %p747_p13, %p741_p12 }
  0x54   : > { %751 = shalt.err (!%p748_p8)
}
  0x55   : > { %p1296_p10 = scmp.ne.s32.totalorder %s1290_s9, 0  ;;  %s1297_s0 = sld [smem:[#allocation20_spill]] }
  0x56   : > { %s205_s24 = scalar_lea.vmem [#allocation2], %s1015_s8  ;;  %s1113_s25 = scalar_lea.hbm %s1266_s2, %s1011_s7 }
  0x57   : > { %639 = dma.hbm_to_vmem [thread:$0]  (!%p1296_p10), %s1069_s6, 128, %s267_s26, %s1080_s13  }
  0x58   : > { %s212_s17 = sshll.u32 %s205_s24, 4  ;;  %s1298_s12 = sand.u32 1, %s912_s20   ;;  %s1107_s17 = int_to_ptr.vmem [resolvable:$true] %s212_s17 }
  0x59   : > { %s202_s6 = scalar_lea.sflag [#allocation3], %s1298_s12 }
  0x5b   : > { %s1104_s15 = scalar_lea.hbm %s1297_s0, %s1011_s7  ;;  %s757_s3 = scalar_lea.hbm %s1297_s0, 256 }
  0x5c   : > { %s752_s26 = scalar_lea.hbm %s1104_s15, 128  ;;  %p758_p1 = scmp.lt.u32.totalorder %s1104_s15, %s1297_s0 }
  0x5d   : > { %p753_p13 = scmp.ne.s32.totalorder %s1104_s15, %s752_s26  ;;  %p759_p3 = scmp.lt.u32.totalorder %s757_s3, %s752_s26 }
  0x5e   : > { %p761_p7 = scmp.lt.u32.totalorder %s752_s26, %s1104_s15 }
  0x5f   : > { %p755_p11 = pnand %p753_p13, %p1040_p2  ;;  %p760_p5 = por %p759_p3, %p758_p1 }
  0x61   : > { %p756_p4 = pneg %p755_p11  ;;  %p762_p9 = por %p761_p7, %p760_p5 }
  0x63   : > { %p763_p6 = pnand %p762_p9, %p756_p4 }
  0x65   : > { %766 = shalt.err (!%p763_p6)
}
  0x66   : > { %s767_s11 = scalar_lea.vmem %s1107_s17, 128  ;;  %s920_s10 = smov [#allocation2]  }
  0x67   : > { %p768_p12 = scmp.ne.s32.totalorder %s1107_s17, %s767_s11  ;;  %s772_s12 = sshll.u32 %s920_s10, 4  ;;  %s773_s12 = int_to_ptr.vmem [resolvable:$false] %s772_s12 }
  0x68   : > { %s774_s21 = scalar_lea.vmem %s773_s12, 256  ;;  %p775_p13 = scmp.lt.s32.totalorder %s1107_s17, %s773_s12 }
  0x69   : > { %p770_p0 = pnand %p768_p12, %p1040_p2  ;;  %p776_p11 = scmp.lt.s32.totalorder %s774_s21, %s767_s11 }
  0x6b   : > { %p771_p8 = pneg %p770_p0  ;;  %p777_p1 = por %p776_p11, %p775_p13 }
  0x6d   : > { %p778_p3 = pnand %p777_p1, %p771_p8 }
  0x6f   : > { %781 = shalt.err (!%p778_p3)
}
  0x70   : > { %630 = dma.hbm_to_vmem [thread:$0]  (!%p1296_p10), %s1104_s15, 128, %s1107_s17, %s202_s6  }
  0x71   : > { %s241_s3 = scalar_lea.vmem [#allocation7], %s1015_s8  ;;  %s1143_s24 = scalar_lea.hbm %s1268_s4, %s1011_s7 }
  0x72   : > { %s248_s26 = sshll.u32 %s241_s3, 4  ;;  %s782_s11 = scalar_lea.hbm %s1113_s25, 128  ;;  %s249_s26 = int_to_ptr.vmem [resolvable:$true] %s248_s26 }
  0x73   : > { %p783_p4 = scmp.ne.s32.totalorder %s1113_s25, %s782_s11  ;;  %s787_s21 = scalar_lea.hbm %s1266_s2, 256 }
  0x74   : > { %p788_p9 = scmp.lt.u32.totalorder %s1113_s25, %s1266_s2  ;;  %p789_p6 = scmp.lt.u32.totalorder %s787_s21, %s782_s11 }
  0x75   : > { %p785_p5 = pnand %p783_p4, %p1040_p2  ;;  %p791_p0 = scmp.lt.u32.totalorder %s782_s11, %s1113_s25 }
  0x76   : > { %p790_p12 = por %p789_p6, %p788_p9 }
  0x77   : > { %p786_p7 = pneg %p785_p5 }
  0x78   : > { %p792_p8 = por %p791_p0, %p790_p12 }
  0x7a   : > { %p793_p13 = pnand %p792_p8, %p786_p7 }
  0x7c   : > { %796 = shalt.err (!%p793_p13)
}
  0x7d   : > { %s797_s7 = scalar_lea.vmem %s249_s26, 128  ;;  %s921_s15 = smov [#allocation7]  }
  0x7e   : > { %p798_p11 = scmp.ne.s32.totalorder %s249_s26, %s797_s7  ;;  %s802_s17 = sshll.u32 %s921_s15, 4  ;;  %s803_s17 = int_to_ptr.vmem [resolvable:$false] %s802_s17 }
  0x7f   : > { %s804_s6 = scalar_lea.vmem %s803_s17, 256  ;;  %p805_p4 = scmp.lt.s32.totalorder %s249_s26, %s803_s17 }
  0x80   : > { %p800_p1 = pnand %p798_p11, %p1040_p2  ;;  %p806_p5 = scmp.lt.s32.totalorder %s804_s6, %s797_s7 }
  0x82   : > { %p801_p3 = pneg %p800_p1  ;;  %p807_p10 = por %p806_p5, %p805_p4 }
  0x84   : > { %p808_p6 = pnand %p807_p10, %p801_p3 }
  0x86   : > { %811 = shalt.err (!%p808_p6)
}
  0x87   : > { %p1299_p9 = scmp.ne.s32.totalorder %s1290_s9, 0  ;;  %s277_s0 = scalar_lea.vmem [#allocation10], %s1015_s8 }
  0x88   : > { %s284_s20 = sshll.u32 %s277_s0, 4  ;;  %s812_s3 = scalar_lea.hbm %s1143_s24, 128  ;;  %s285_s20 = int_to_ptr.vmem [resolvable:$true] %s284_s20 }
  0x89   : > { %636 = dma.hbm_to_vmem [thread:$0]  (!%p1299_p9), %s1113_s25, 128, %s249_s26, %s1034_s16  }
  0x8a   : > { %p813_p7 = scmp.ne.s32.totalorder %s1143_s24, %s812_s3  ;;  %s817_s11 = scalar_lea.hbm %s1268_s4, 256 }
  0x8b   : > { %p818_p0 = scmp.lt.u32.totalorder %s1143_s24, %s1268_s4  ;;  %p819_p8 = scmp.lt.u32.totalorder %s817_s11, %s812_s3 }
  0x8c   : > { %p815_p12 = pnand %p813_p7, %p1040_p2  ;;  %p821_p11 = scmp.lt.u32.totalorder %s812_s3, %s1143_s24 }
  0x8d   : > { %p820_p13 = por %p819_p8, %p818_p0 }
  0x8e   : > { %p816_p10 = pneg %p815_p12 }
  0x8f   : > { %p822_p1 = por %p821_p11, %p820_p13 }
  0x91   : > { %p823_p3 = pnand %p822_p1, %p816_p10 }
  0x93   : > { %826 = shalt.err (!%p823_p3)
}
  0x94   : > { %s827_s8 = scalar_lea.vmem %s285_s20, 128  ;;  %s922_s16 = smov [#allocation10]  }
  0x95   : > { %p828_p4 = scmp.ne.s32.totalorder %s285_s20, %s827_s8  ;;  %s832_s25 = sshll.u32 %s922_s16, 4  ;;  %s833_s25 = int_to_ptr.vmem [resolvable:$false] %s832_s25 }
  0x96   : > { %s834_s26 = scalar_lea.vmem %s833_s25, 256  ;;  %p835_p7 = scmp.lt.s32.totalorder %s285_s20, %s833_s25 }
  0x97   : > { %p830_p5 = pnand %p828_p4, %p1040_p2  ;;  %p836_p12 = scmp.lt.s32.totalorder %s834_s26, %s827_s8 }
  0x99   : > { %p831_p6 = pneg %p830_p5  ;;  %p837_p9 = por %p836_p12, %p835_p7 }
  0x9b   : > { %p838_p0 = pnand %p837_p9, %p831_p6 }
  0x9d   : > { %841 = shalt.err (!%p838_p0)
}
  0x9e   : > { %p1300_p8 = scmp.ne.s32.totalorder %s1290_s9, 0  ;;  %p1301_p10 = scmp.ne.s32.totalorder %s1295_s14, 0 }
  0x9f   : > { %s1185_s23 = sand.u32 (!%p1301_p10), 1, %s908_s19   ;;  %p1302_p2 = scmp.ne.s32.totalorder (!%p1301_p10), %s1287_s28, 0 }
  0xa0   : > { %642 = dma.hbm_to_vmem [thread:$0]  (!%p1300_p8), %s1143_s24, 128, %s285_s20, %s1080_s13  }
  0xa1   : > { %293 = sbr.rel (%p1301_p10) target bundleno = 659 (0x293), region = 40  ;;  %s1188_s21 = sshll.u32 (!%p1301_p10), %s1185_s23, 3 }
  0xa2   : > { %s296_s7 = scalar_lea.sflag (!%p1301_p10), [#allocation3], %s1185_s23  ;;  %s299_s15 = scalar_lea.vmem (!%p1301_p10), [#allocation2], %s1188_s21 }
  0xa8   : > { %887 = dma.done.wait (%p1302_p2), %s296_s7, 128  }
  0xa9   : > { %889 = vsyncadd (%p1302_p2), %s296_s7, 4294967168  ;;  %s304_s9 = sand.u32 1, %s976_s22   ;;  %s308_s13 = scalar_lea.vmem [#allocation5], %s1188_s21 }
  0xaa   : > { %s305_s14 = scalar_lea.sflag [#allocation6], %s304_s9 }
  0xab   : > { %891 = dma.done.wait (%p1302_p2), %s305_s14, 256  }
  0xac   : > { %893 = vsyncadd (%p1302_p2), %s305_s14, 4294967040  ;;  %s317_s24 = scalar_lea.vmem [#allocation7], %s1188_s21  ;;  %s323_s17 = scalar_lea.sflag [#allocation9], %s304_s9 }
  0xad   : > { %s326_s6 = scalar_lea.vmem [#allocation8], %s1188_s21 }
  0xae   : > { %895 = dma.done.wait (%p1302_p2), %s323_s17, 256  }
  0xaf   : > { %897 = vsyncadd (%p1302_p2), %s323_s17, 4294967040  ;;  %s335_s0 = scalar_lea.vmem [#allocation10], %s1188_s21  ;;  %v398_v8 = vld [vmem:[%s326_s6] sm:$0xff]  ;;  %vm401_vm0 = vcmask 80896   ;;  %s923_s28 = smov 32   ;;  %v386_v24 = vld [vmem:[%s317_s24] sm:$0xff] }
  0xb0   : > { %v389_v0 = vld [vmem:[%s335_s0] sm:$0xff]  ;;  %v383_v21 = vld [vmem:[%s308_s13] sm:$0xff]  ;;  %s612_s20 = sshll.u32 %s976_s22, 7  ;;  %s381_s3 = scalar_lea.vmem [#allocation11], %s1188_s21  ;;  %vm417_vm1 = vcmask 261120   ;;  %vm419_vm2 = vcmask 343040  }
  0xb1   : > { %v390_v1 = vadd.f32 1e-12, %v389_v0  ;;  %v384_v22 = vmul.f32 1.442695, %v383_v21  ;;  %v382_v26 = vld [vmem:[%s299_s15] sm:$0xff]  ;;  %s435_s1 = sshll.u32 %s381_s3, 4  ;;  %s1220_s10 = scalar_lea.hbm %s1269_s5, %s612_s20  ;;  %s1222_s1 = int_to_ptr.vmem [resolvable:$true] %s435_s1 }
  0xb2   : > { %s422_s12 = scalar_lea.sflag [#allocation4], %s1185_s23  ;;  %s842_s8 = scalar_lea.vmem %s1222_s1, 128 }
  0xb3   : > { %682 = vlog2.f32 %v390_v1  ;;  %p843_p9 = scmp.ne.s32.totalorder %s1222_s1, %s842_s8  ;;  %p1303_p13 = scmp.ne.s32.totalorder %s1288_s29, 0 }
  0xb4   : > { %s924_s22 = smov [#allocation11]  }
  0xb5   : > { %p844_p11 = pnand %p843_p9, %p1303_p13  ;;  %s846_s16 = sshll.u32 %s924_s22, 4  ;;  %s847_s16 = int_to_ptr.vmem [resolvable:$false] %s846_s16 }
  0xb6   : > { %s848_s25 = scalar_lea.vmem %s847_s16, 256  ;;  %p849_p3 = scmp.lt.s32.totalorder %s1222_s1, %s847_s16 }
  0xb7   : > { %p845_p1 = pneg %p844_p11  ;;  %p850_p4 = scmp.lt.s32.totalorder %s848_s25, %s842_s8 }
  0xb9   : > { %p851_p5 = por %p850_p4, %p849_p3 }
  0xbb   : > { %p852_p6 = pnand %p851_p5, %p845_p1 }
  0xbd   : > { %v683_v2 = vpop.eup %682 }
  0xbe   : > { %v392_v3 = vmul.f32 0.6931472, %v683_v2 }
  0xc0   : > { %v393_v4 = vsub.f32 0.0, %v392_v3 }
  0xc2   : > { %v394_v5 = vadd.f32 1e-12, %v393_v4 }
  0xc4   : > { %684 = vlog2.f32 %v394_v5 }
  0xce   : > { %v685_v6 = vpop.eup %684 }
  0xcf   : > { %v396_v7 = vmul.f32 0.6931472, %v685_v6 }
  0xd1   : > { %v397_v9 = vsub.f32 0.0, %v396_v7 }
  0xd3   : > { %v399_v10 = vadd.f32 %v398_v8, %v397_v9 }
  0xd5   : > { %v400_v11 = vmul.f32 1.4925373, %v399_v10 }
  0xd7   : > { %v402_v12 = vsel %vm401_vm0, %v400_v11, -inf }
  0xd8   : > { %403 = vmax.xlane.f32.xlu0 %v402_v12 }
 0x165   : > { %v404_v13 = vpop.xlane.xlu0 %403 }
 0x166   : > { %v405_v14 = vsub.f32 %v400_v11, %v404_v13 }
 0x168   : > { %v406_v15 = vmul.f32 1.442695, %v405_v14 }
 0x16a   : > { %686 = vpow2.f32 %v406_v15 }
 0x174   : > { %v687_v16 = vpop.eup %686 }
 0x175   : > { %v408_v17 = vsel %vm401_vm0, %v687_v16, 0.0 }
 0x176   : > { %409 = vadd.xlane.f32.xlu0 %v408_v17 }
 0x203   : > { %v410_v18 = vpop.xlane.xlu0 %409 }
 0x204   : > { %688 = vrcp.f32 %v410_v18 }
 0x205   : > { %690 = vpow2.f32 %v384_v22 }
 0x20e   : > { %v689_v19 = vpop.eup %688 }
 0x20f   : > { %v412_v20 = vmul.f32 %v689_v19, %v687_v16  ;;  %v691_v23 = vpop.eup %690 }
 0x210   : > { %v387_v25 = vmul.f32 %v691_v23, %v386_v24 }
 0x211   : > { %414 = vrot.lane.b32.xlu1 %v412_v20, %s923_s28 }
 0x212   : > { %v388_v27 = vadd.f32 %v387_v25, %v382_v26 }
 0x283   : > { %v415_v28 = vpop.permute.xlu1 %414 }
 0x284   : > { %v418_v29 = vsel %vm417_vm1, %v388_v27, %v415_v28 }
 0x285   : > { %420 = vst.msk [vmem:[%s381_s3] sm:$0xff] %vm419_vm2, %v418_v29 }
 0x286   : > { %855 = shalt.err (!%p852_p6)
}
 0x287   : > { %s856_s26 = scalar_lea.hbm %s1220_s10, 128  ;;  %s860_s7 = scalar_lea.hbm %s1269_s5, 256 }
 0x288   : > { %p857_p7 = scmp.ne.s32.totalorder %s1220_s10, %s856_s26  ;;  %p861_p8 = scmp.lt.u32.totalorder %s1220_s10, %s1269_s5 }
 0x289   : > { %p862_p10 = scmp.lt.u32.totalorder %s860_s7, %s856_s26  ;;  %p864_p9 = scmp.lt.u32.totalorder %s856_s26, %s1220_s10 }
 0x28a   : > { %p858_p12 = pnand %p857_p7, %p1303_p13 }
 0x28b   : > { %p863_p2 = por %p862_p10, %p861_p8 }
 0x28c   : > { %p859_p0 = pneg %p858_p12 }
 0x28d   : > { %p865_p11 = por %p864_p9, %p863_p2 }
 0x28f   : > { %p866_p1 = pnand %p865_p11, %p859_p0 }
 0x291   : > { %869 = shalt.err (!%p866_p1)
}
 0x292   : > { %625 = dma.vmem_to_hbm [thread:$0]  (%p1303_p13), %s1222_s1, 128, %s1220_s10, %s422_s12  }
 0x293 PF: > { %s1304_s14 = sld [smem:[#allocation17_spill]]  ;;  %s447_s13 = sand.u32 1, %s904_s18  }
 0x294   : > { %p1305_p3 = scmp.ne.s32.totalorder %s1289_s30, 0  ;;  %s448_s24 = scalar_lea.sflag [#allocation4], %s447_s13 }
 0x299   : > { %p1306_p4 = scmp.ge.s32.totalorder %s1304_s14, 2 }
 0x29b   : > { %p644_p5 = pnand %p1306_p4, %p1305_p3 }
 0x29d   : > { %899 = dma.done.wait (!%p644_p5), %s448_s24, 128  }
 0x29e   : > { %901 = vsyncadd (!%p644_p5), %s448_s24, 4294967168  ;;  %s1307_s21 = sld [smem:[#allocation18_spill]]  ;;  %s1308_s17 = sld [smem:[#allocation16_spill]] }
 0x29f   : > { %s1309_s20 = sld [smem:[#allocation19_spill]]  ;;  %s1310_s18 = smov %s908_s19 }
 0x2a4   : > { %p24_p6 = scmp.ge.s32.totalorder %s1307_s21, 4   ;;  %s1311_s19 = smov %s1308_s17 }
 0x2a6   :  { %26 = sbr.rel (!%p24_p6) target bundleno = 13 (0xd), region = 133 }
 0x2ad   :  { %453 = vsyncpa [#allocation3], 1 }
 0x2ae   :  { %455 = vsyncpa [#allocation3 + $0x1], 1 }
 0x2af   :  { %456 = vsyncpa [#allocation6], 1 }
 0x2b0   :  { %458 = vsyncpa [#allocation6 + $0x1], 1 }
 0x2b1   :  { %459 = vsyncpa [#allocation9], 1 }
 0x2b2   :  { %461 = vsyncpa [#allocation9 + $0x1], 1 }
 0x2b3   :  { %462 = vsyncpa [#allocation4], 1 }
 0x2b4   :  { %464 = vsyncpa [#allocation4 + $0x1], 1 }

</bundles_post_ra>
